<compile_context>
chip_gen: v6e
topology: v6e:2x2x1
jax: 0.10.0
libtpu: 0.0.40
codegen_flags: <defaults>
</compile_context>

<pallas_src>
import functools
import math

import jax
import jax.numpy as jnp
from jax import lax
from jax.experimental import pallas as pl
from jax.experimental.pallas import tpu as pltpu


def _layernorm(v, g, b, eps=1e-5):
    # v: (S, D) f32, g/b: (1, D) f32
    mu = jnp.mean(v, axis=-1, keepdims=True)
    var = jnp.mean((v - mu) ** 2, axis=-1, keepdims=True)
    return (v - mu) * lax.rsqrt(var + eps) * g + b


def rab_kernel(x_ref, ln1g_ref, ln1b_ref,
               wq_ref, bq_ref, wk_ref, bk_ref, wv_ref, bv_ref,
               wo_ref, bo_ref, ln2g_ref, ln2b_ref,
               wfc_ref, bfc_ref, wpr_ref, bpr_ref,
               o_ref, ctx_ref, *, n_head, mlp_chunk):
    # x_ref: (1, S, D) block for the current batch element.
    x = x_ref[0].astype(jnp.float32)                         # (S, D) f32
    S, D = x.shape
    hd = D // n_head

    # ---------------- attention branch: ln_1 -> MHA -> residual ----------------
    h = _layernorm(x, ln1g_ref[...], ln1b_ref[...]).astype(jnp.bfloat16)

    def proj(w_ref, b_ref):
        # (S,D)@(D,D) in bf16, f32 accumulate, bias add in f32, held as bf16.
        return (jnp.dot(h, w_ref[...], preferred_element_type=jnp.float32)
                + b_ref[...]).astype(jnp.bfloat16)

    q = proj(wq_ref, bq_ref)        # 1/sqrt(hd) already folded into wq/bq
    k = proj(wk_ref, bk_ref)
    v = proj(wv_ref, bv_ref)

    # Per-head attention; head outputs land in the (S, D) bf16 context scratch
    # at static lane offsets (no lane-dim concatenate, no per-head out-proj).
    for hi in range(n_head):
        sl = slice(hi * hd, (hi + 1) * hd)
        qh, kh, vh = q[:, sl], k[:, sl], v[:, sl]            # (S, hd) bf16
        # q . k^T without materializing a transpose (contract last dims).
        s = lax.dot_general(qh, kh, (((1,), (1,)), ((), ())),
                            preferred_element_type=jnp.float32)          # (S, S)
        s = s - jnp.max(s, axis=-1, keepdims=True)
        p = jnp.exp(s)
        recip = pl.reciprocal(jnp.sum(p, axis=-1, keepdims=True), approx=True)
        hout = jnp.dot(p.astype(jnp.bfloat16), vh,
                       preferred_element_type=jnp.float32)                # (S, hd)
        # Scale AFTER p@v: S*hd multiplies instead of S*S.
        ctx_ref[:, sl] = (hout * recip).astype(jnp.bfloat16)

    # Single full-depth (K = D) out-projection.
    attn = jnp.dot(ctx_ref[...], wo_ref[...], preferred_element_type=jnp.float32)
    x1 = x + attn + bo_ref[...]

    # -------- MLP branch: ln_2 -> c_fc -> QuickGELU -> c_proj -> residual ------
    h2 = _layernorm(x1, ln2g_ref[...], ln2b_ref[...]).astype(jnp.bfloat16)
    hidden = wfc_ref.shape[1]
    n_chunks = max(1, -(-hidden // mlp_chunk))
    while hidden % n_chunks:            # trace-time: force an even split
        n_chunks -= 1
    chunk = hidden // n_chunks

    acc = jnp.zeros((S, D), jnp.float32)
    for c in range(n_chunks):
        lo = c * chunk
        mc = (jnp.dot(h2, wfc_ref[:, lo:lo + chunk],
                      preferred_element_type=jnp.float32)
              + bfc_ref[:, lo:lo + chunk])                               # (S, chunk) f32
        # QuickGELU. (f32 elementwise; on v6e/v7x this could run in bf16 —
        # see TODOs — kept f32 for v5e portability / parity with the reference.)
        mc = mc * jax.nn.sigmoid(1.702 * mc)
        acc = acc + jnp.dot(mc.astype(jnp.bfloat16), wpr_ref[lo:lo + chunk, :],
                            preferred_element_type=jnp.float32)          # (S, D)

    o_ref[0] = (x1 + acc + bpr_ref[...]).astype(o_ref.dtype)


def _prep_args(params, n_head):
    """Pre-transform PyTorch-layout params for the kernel (trace-time, free)."""
    D = params["ln1_g"].shape[0]
    hd = D // n_head
    scale = 1.0 / math.sqrt(hd)

    in_w = params["in_proj_w"]                       # (3D, D)  rows = [q; k; v]
    in_b = params["in_proj_b"]                       # (3D,)
    wq, wk, wv = in_w[:D] * scale, in_w[D:2 * D], in_w[2 * D:]
    bq, bk, bv = in_b[:D] * scale, in_b[D:2 * D], in_b[2 * D:]

    def row(a):          # biases / LN params: (1, N) f32 (tiny; keep f32)
        return a.reshape(1, -1).astype(jnp.float32)

    def wmat(a):         # weights: (out, in) -> (in, out), bf16 for the MXU
        return a.T.astype(jnp.bfloat16)

    return [
        row(params["ln1_g"]), row(params["ln1_b"]),
        wmat(wq), row(bq), wmat(wk), row(bk), wmat(wv), row(bv),
        wmat(params["out_proj_w"]), row(params["out_proj_b"]),
        row(params["ln2_g"]), row(params["ln2_b"]),
        wmat(params["fc_w"]), row(params["fc_b"]),
        wmat(params["proj_w"]), row(params["proj_b"]),
    ]


@functools.lru_cache(maxsize=None)
def _single_buffer_supported():
    """Probe ONCE (eager lower+compile of a tiny kernel) whether this build
    accepts pl.Buffered(buffer_count=1) block specs.  Deterministic even when
    the real call is wrapped in jax.jit."""
    try:
        def _copy(x_ref, o_ref):
            o_ref[...] = x_ref[...]

        fn = pl.pallas_call(
            _copy,
            out_shape=jax.ShapeDtypeStruct((8, 128), jnp.float32),
            grid_spec=pltpu.PrefetchScalarGridSpec(
                num_scalar_prefetch=0,
                grid=(2,),
                in_specs=[pl.BlockSpec((8, 128), lambda i: (0, 0),
                                       pipeline_mode=pl.Buffered(buffer_count=1))],
                out_specs=pl.BlockSpec((8, 128), lambda i: (0, 0)),
            ),
        )
        jax.jit(fn).lower(jnp.zeros((8, 128), jnp.float32)).compile()
        return True
    except Exception:
        return False


def _vmem_limit_bytes():
    """Generation-aware scoped-VMEM limit: ~75% of physical, capped at 100 MiB
    (v5e/v6e: ~96 MiB of 128 MiB; v7x: 48 MiB of 64 MiB)."""
    try:
        cap = int(pltpu.get_tpu_info().vmem_capacity_bytes)
    except Exception:
        return 48 * 1024 * 1024
    return max(32 * 1024 * 1024, min(cap * 3 // 4, 100 * 1024 * 1024))


def _pallas_forward(xb, args, n_head, *, mlp_chunk=2048):
    B, S, D = xb.shape
    single_buffer = _single_buffer_supported()

    def wspec(a):
        nd = a.ndim
        if single_buffer:
            # Grid-invariant block: single-buffer it (no double-buffered weight
            # VMEM across the batch grid).
            return pl.BlockSpec(a.shape, lambda b, _nd=nd: (0,) * _nd,
                                pipeline_mode=pl.Buffered(buffer_count=1))
        # Constant block index => Pallas elides re-copies; only the extra buffer
        # allocation is paid.
        return pl.BlockSpec(a.shape, lambda b, _nd=nd: (0,) * _nd)

    in_specs = [pl.BlockSpec((1, S, D), lambda b: (b, 0, 0))] + [wspec(a) for a in args]
    out_spec = pl.BlockSpec((1, S, D), lambda b: (b, 0, 0))

    return pl.pallas_call(
        functools.partial(rab_kernel, n_head=n_head, mlp_chunk=mlp_chunk),
        out_shape=jax.ShapeDtypeStruct((B, S, D), xb.dtype),
        grid_spec=pltpu.PrefetchScalarGridSpec(
            num_scalar_prefetch=0,
            grid=(B,),
            in_specs=in_specs,
            out_specs=out_spec,
            scratch_shapes=[pltpu.VMEM((S, D), jnp.bfloat16)],   # per-step context
        ),
        compiler_params=pltpu.CompilerParams(
            dimension_semantics=("parallel",),
            vmem_limit_bytes=_vmem_limit_bytes(),
        ),
    )(xb, *args)


def residual_attention_block_batch_first(xb, params, n_head):
    """xb: (batch, seq, d_model) — preferred layout (no HBM transposes)."""
    args = _prep_args(params, n_head)
    return _pallas_forward(xb, args, n_head)


def residual_attention_block(x, params, n_head):
    """x: (seq, batch, d_model) — same layout as the PyTorch module.

    Callers already holding (batch, seq, d_model) should use
    residual_attention_block_batch_first to avoid the HBM round-trip transposes.
    """
    xb = jnp.transpose(x, (1, 0, 2))                          # (B, S, D)
    out = residual_attention_block_batch_first(xb, params, n_head)
    return jnp.transpose(out, (1, 0, 2))                      # back to (S, B, D)


def ref_forward(x, p, n_head):
    """Pure-JAX f32 reference mirroring the PyTorch module math (eval mode)."""
    S, B, D = x.shape
    hd = D // n_head

    def ln(v, g, b):
        v32 = v.astype(jnp.float32)
        mu = v32.mean(-1, keepdims=True)
        var = ((v32 - mu) ** 2).mean(-1, keepdims=True)
        return ((v32 - mu) / jnp.sqrt(var + 1e-5) * g + b).astype(v.dtype)

    h = ln(x, p["ln1_g"], p["ln1_b"])
    qkv = h @ p["in_proj_w"].T + p["in_proj_b"]               # (S, B, 3D)
    q, k, v = jnp.split(qkv, 3, axis=-1)
    q = q * (1.0 / math.sqrt(hd))

    def heads(t):  # (S, B, D) -> (B, H, S, hd)
        return t.reshape(S, B, n_head, hd).transpose(1, 2, 0, 3)

    qh, kh, vh = heads(q), heads(k), heads(v)
    s = jnp.einsum("bhqd,bhkd->bhqk", qh, kh)
    pa = jax.nn.softmax(s, axis=-1)
    ctx = jnp.einsum("bhqk,bhkd->bhqd", pa, vh)
    ctx = ctx.transpose(2, 0, 1, 3).reshape(S, B, D)
    attn_out = ctx @ p["out_proj_w"].T + p["out_proj_b"]
    x1 = x + attn_out

    h2 = ln(x1, p["ln2_g"], p["ln2_b"])
    m = h2 @ p["fc_w"].T + p["fc_b"]
    m = m * jax.nn.sigmoid(1.702 * m)
    m = m @ p["proj_w"].T + p["proj_b"]
    return x1 + m


if __name__ == "__main__":
    S, B, D, H = 8, 2, 32, 4          # seq=8, batch=2, d_model=32, n_head=4

    key = jax.random.PRNGKey(0)
    ks = jax.random.split(key, 13)
    scale = 0.05
    params = {
        "ln1_g": 1.0 + 0.1 * jax.random.normal(ks[0], (D,), jnp.float32),
        "ln1_b": 0.1 * jax.random.normal(ks[1], (D,), jnp.float32),
        "in_proj_w": scale * jax.random.normal(ks[2], (3 * D, D), jnp.float32),
        "in_proj_b": scale * jax.random.normal(ks[3], (3 * D,), jnp.float32),
        "out_proj_w": scale * jax.random.normal(ks[4], (D, D), jnp.float32),
        "out_proj_b": scale * jax.random.normal(ks[5], (D,), jnp.float32),
        "ln2_g": 1.0 + 0.1 * jax.random.normal(ks[6], (D,), jnp.float32),
        "ln2_b": 0.1 * jax.random.normal(ks[7], (D,), jnp.float32),
        "fc_w": scale * jax.random.normal(ks[8], (4 * D, D), jnp.float32),
        "fc_b": scale * jax.random.normal(ks[9], (4 * D,), jnp.float32),
        "proj_w": scale * jax.random.normal(ks[10], (D, 4 * D), jnp.float32),
        "proj_b": scale * jax.random.normal(ks[11], (D,), jnp.float32),
    }

    x = jax.random.normal(ks[12], (S, B, D), jnp.float32)

    out = residual_attention_block(x, params, H)
    out = jax.block_until_ready(out)

    ref = ref_forward(x, params, H)
    assert out.shape == (S, B, D)
    # bf16 MXU inputs with f32 accumulation (plus approx softmax reciprocal) vs
    # an all-f32 reference: expect ~1e-3 absolute error, so compare at 1e-2.
    max_err = jnp.max(jnp.abs(out - ref))
    assert jnp.allclose(out, ref, atol=1e-2, rtol=1e-2), f"max abs err {max_err}"

    print("KERNEL_OK")
</pallas_src>

<mosaic_0001>
module attributes {stable_mosaic.version = 11 : i64} {
  func.func @rab_kernel(%arg0: i32, %arg1: memref<1x8x32xf32, #tpu.memory_space<vmem>>, %arg2: memref<1x32xf32, #tpu.memory_space<vmem>>, %arg3: memref<1x32xf32, #tpu.memory_space<vmem>>, %arg4: memref<32x32xbf16, #tpu.memory_space<vmem>>, %arg5: memref<1x32xf32, #tpu.memory_space<vmem>>, %arg6: memref<32x32xbf16, #tpu.memory_space<vmem>>, %arg7: memref<1x32xf32, #tpu.memory_space<vmem>>, %arg8: memref<32x32xbf16, #tpu.memory_space<vmem>>, %arg9: memref<1x32xf32, #tpu.memory_space<vmem>>, %arg10: memref<32x32xbf16, #tpu.memory_space<vmem>>, %arg11: memref<1x32xf32, #tpu.memory_space<vmem>>, %arg12: memref<1x32xf32, #tpu.memory_space<vmem>>, %arg13: memref<1x32xf32, #tpu.memory_space<vmem>>, %arg14: memref<32x128xbf16, #tpu.memory_space<vmem>>, %arg15: memref<1x128xf32, #tpu.memory_space<vmem>>, %arg16: memref<128x32xbf16, #tpu.memory_space<vmem>>, %arg17: memref<1x32xf32, #tpu.memory_space<vmem>>, %arg18: memref<1x8x32xf32, #tpu.memory_space<vmem>>, %arg19: memref<8x32xbf16, #tpu.memory_space<vmem>>) attributes {dimension_semantics = [#tpu.dimension_semantics<parallel>], iteration_bounds = array<i64: 2>, scalar_prefetch = 0 : i64, scratch_operands = 1 : i64, tpu.core_type = #tpu.core_type<tc>, window_params = [{transform_indices = @transform_0, window_bounds = array<i64: 1, 8, 32>}, {pipeline_mode = #tpu.pipeline_mode<synchronous>, transform_indices = @transform_1, window_bounds = array<i64: 1, 32>}, {pipeline_mode = #tpu.pipeline_mode<synchronous>, transform_indices = @transform_2, window_bounds = array<i64: 1, 32>}, {pipeline_mode = #tpu.pipeline_mode<synchronous>, transform_indices = @transform_3, window_bounds = array<i64: 32, 32>}, {pipeline_mode = #tpu.pipeline_mode<synchronous>, transform_indices = @transform_4, window_bounds = array<i64: 1, 32>}, {pipeline_mode = #tpu.pipeline_mode<synchronous>, transform_indices = @transform_5, window_bounds = array<i64: 32, 32>}, {pipeline_mode = #tpu.pipeline_mode<synchronous>, transform_indices = @transform_6, window_bounds = array<i64: 1, 32>}, {pipeline_mode = #tpu.pipeline_mode<synchronous>, transform_indices = @transform_7, window_bounds = array<i64: 32, 32>}, {pipeline_mode = #tpu.pipeline_mode<synchronous>, transform_indices = @transform_8, window_bounds = array<i64: 1, 32>}, {pipeline_mode = #tpu.pipeline_mode<synchronous>, transform_indices = @transform_9, window_bounds = array<i64: 32, 32>}, {pipeline_mode = #tpu.pipeline_mode<synchronous>, transform_indices = @transform_10, window_bounds = array<i64: 1, 32>}, {pipeline_mode = #tpu.pipeline_mode<synchronous>, transform_indices = @transform_11, window_bounds = array<i64: 1, 32>}, {pipeline_mode = #tpu.pipeline_mode<synchronous>, transform_indices = @transform_12, window_bounds = array<i64: 1, 32>}, {pipeline_mode = #tpu.pipeline_mode<synchronous>, transform_indices = @transform_13, window_bounds = array<i64: 32, 128>}, {pipeline_mode = #tpu.pipeline_mode<synchronous>, transform_indices = @transform_14, window_bounds = array<i64: 1, 128>}, {pipeline_mode = #tpu.pipeline_mode<synchronous>, transform_indices = @transform_15, window_bounds = array<i64: 128, 32>}, {pipeline_mode = #tpu.pipeline_mode<synchronous>, transform_indices = @transform_16, window_bounds = array<i64: 1, 32>}, {transform_indices = @transform_17, window_bounds = array<i64: 1, 8, 32>}]} {
    %c0 = arith.constant 0 : index
    %c0_0 = arith.constant 0 : index
    %c0_1 = arith.constant 0 : index
    %0 = vector.load %arg1[%c0, %c0_0, %c0_1] : memref<1x8x32xf32, #tpu.memory_space<vmem>>, vector<1x8x32xf32>
    %1 = vector.shape_cast %0 : vector<1x8x32xf32> to vector<8x32xf32>
    %c0_2 = arith.constant 0 : index
    %c0_3 = arith.constant 0 : index
    %2 = vector.load %arg2[%c0_2, %c0_3] : memref<1x32xf32, #tpu.memory_space<vmem>>, vector<1x32xf32>
    %c0_4 = arith.constant 0 : index
    %c0_5 = arith.constant 0 : index
    %3 = vector.load %arg3[%c0_4, %c0_5] : memref<1x32xf32, #tpu.memory_space<vmem>>, vector<1x32xf32>
    %cst = arith.constant dense<0.000000e+00> : vector<8xf32>
    %4 = vector.multi_reduction <add>, %1, %cst [1] : vector<8x32xf32> to vector<8xf32>
    %5 = vector.shape_cast %4 : vector<8xf32> to vector<8x1xf32>
    %cst_6 = arith.constant 3.200000e+01 : f32
    %6 = vector.broadcast %cst_6 : f32 to vector<8x1xf32>
    %7 = arith.divf %5, %6 : vector<8x1xf32>
    %8 = vector.broadcast %7 : vector<8x1xf32> to vector<8x32xf32>
    %9 = arith.subf %1, %8 : vector<8x32xf32>
    %10 = arith.mulf %9, %9 : vector<8x32xf32>
    %cst_7 = arith.constant dense<0.000000e+00> : vector<8xf32>
    %11 = vector.multi_reduction <add>, %10, %cst_7 [1] : vector<8x32xf32> to vector<8xf32>
    %12 = vector.shape_cast %11 : vector<8xf32> to vector<8x1xf32>
    %cst_8 = arith.constant 3.200000e+01 : f32
    %13 = vector.broadcast %cst_8 : f32 to vector<8x1xf32>
    %14 = arith.divf %12, %13 : vector<8x1xf32>
    %15 = vector.broadcast %7 : vector<8x1xf32> to vector<8x32xf32>
    %16 = arith.subf %1, %15 : vector<8x32xf32>
    %cst_9 = arith.constant 9.99999974E-6 : f32
    %17 = vector.broadcast %cst_9 : f32 to vector<8x1xf32>
    %18 = arith.addf %14, %17 : vector<8x1xf32>
    %19 = math.rsqrt %18 : vector<8x1xf32>
    %20 = vector.broadcast %19 : vector<8x1xf32> to vector<8x32xf32>
    %21 = arith.mulf %16, %20 : vector<8x32xf32>
    %22 = vector.broadcast %2 : vector<1x32xf32> to vector<8x32xf32>
    %23 = arith.mulf %21, %22 : vector<8x32xf32>
    %24 = vector.broadcast %3 : vector<1x32xf32> to vector<8x32xf32>
    %25 = arith.addf %23, %24 : vector<8x32xf32>
    %26 = arith.truncf %25 : vector<8x32xf32> to vector<8x32xbf16>
    %c0_10 = arith.constant 0 : index
    %c0_11 = arith.constant 0 : index
    %27 = vector.load %arg4[%c0_10, %c0_11] : memref<32x32xbf16, #tpu.memory_space<vmem>>, vector<32x32xbf16>
    %cst_12 = arith.constant dense<0.000000e+00> : vector<8x32xf32>
    %28 = tpu.matmul %26, %27, %cst_12 {dimension_numbers = #tpu.dot_dimension_numbers<[1], [0], [0], [1], [0, 0, 1, 1], [], []>} : vector<8x32xbf16>, vector<32x32xbf16>, vector<8x32xf32> -> vector<8x32xf32>
    %c0_13 = arith.constant 0 : index
    %c0_14 = arith.constant 0 : index
    %29 = vector.load %arg5[%c0_13, %c0_14] : memref<1x32xf32, #tpu.memory_space<vmem>>, vector<1x32xf32>
    %30 = vector.broadcast %29 : vector<1x32xf32> to vector<8x32xf32>
    %31 = arith.addf %28, %30 : vector<8x32xf32>
    %32 = arith.truncf %31 : vector<8x32xf32> to vector<8x32xbf16>
    %c0_15 = arith.constant 0 : index
    %c0_16 = arith.constant 0 : index
    %33 = vector.load %arg6[%c0_15, %c0_16] : memref<32x32xbf16, #tpu.memory_space<vmem>>, vector<32x32xbf16>
    %cst_17 = arith.constant dense<0.000000e+00> : vector<8x32xf32>
    %34 = tpu.matmul %26, %33, %cst_17 {dimension_numbers = #tpu.dot_dimension_numbers<[1], [0], [0], [1], [0, 0, 1, 1], [], []>} : vector<8x32xbf16>, vector<32x32xbf16>, vector<8x32xf32> -> vector<8x32xf32>
    %c0_18 = arith.constant 0 : index
    %c0_19 = arith.constant 0 : index
    %35 = vector.load %arg7[%c0_18, %c0_19] : memref<1x32xf32, #tpu.memory_space<vmem>>, vector<1x32xf32>
    %36 = vector.broadcast %35 : vector<1x32xf32> to vector<8x32xf32>
    %37 = arith.addf %34, %36 : vector<8x32xf32>
    %38 = arith.truncf %37 : vector<8x32xf32> to vector<8x32xbf16>
    %c0_20 = arith.constant 0 : index
    %c0_21 = arith.constant 0 : index
    %39 = vector.load %arg8[%c0_20, %c0_21] : memref<32x32xbf16, #tpu.memory_space<vmem>>, vector<32x32xbf16>
    %cst_22 = arith.constant dense<0.000000e+00> : vector<8x32xf32>
    %40 = tpu.matmul %26, %39, %cst_22 {dimension_numbers = #tpu.dot_dimension_numbers<[1], [0], [0], [1], [0, 0, 1, 1], [], []>} : vector<8x32xbf16>, vector<32x32xbf16>, vector<8x32xf32> -> vector<8x32xf32>
    %c0_23 = arith.constant 0 : index
    %c0_24 = arith.constant 0 : index
    %41 = vector.load %arg9[%c0_23, %c0_24] : memref<1x32xf32, #tpu.memory_space<vmem>>, vector<1x32xf32>
    %42 = vector.broadcast %41 : vector<1x32xf32> to vector<8x32xf32>
    %43 = arith.addf %40, %42 : vector<8x32xf32>
    %44 = arith.truncf %43 : vector<8x32xf32> to vector<8x32xbf16>
    %45 = vector.extract_strided_slice %32 {offsets = [0, 0], sizes = [8, 8], strides = [1, 1]} : vector<8x32xbf16> to vector<8x8xbf16>
    %46 = vector.extract_strided_slice %38 {offsets = [0, 0], sizes = [8, 8], strides = [1, 1]} : vector<8x32xbf16> to vector<8x8xbf16>
    %47 = vector.extract_strided_slice %44 {offsets = [0, 0], sizes = [8, 8], strides = [1, 1]} : vector<8x32xbf16> to vector<8x8xbf16>
    %cst_25 = arith.constant dense<0.000000e+00> : vector<8x8xf32>
    %48 = tpu.matmul %45, %46, %cst_25 {dimension_numbers = #tpu.dot_dimension_numbers<[1], [1], [0], [0], [0, 0, 1, 0], [], []>} : vector<8x8xbf16>, vector<8x8xbf16>, vector<8x8xf32> -> vector<8x8xf32>
    %cst_26 = arith.constant dense<0xFF800000> : vector<8xf32>
    %49 = vector.multi_reduction <maximumf>, %48, %cst_26 [1] : vector<8x8xf32> to vector<8xf32>
    %50 = vector.shape_cast %49 : vector<8xf32> to vector<8x1xf32>
    %51 = vector.broadcast %50 : vector<8x1xf32> to vector<8x8xf32>
    %52 = arith.subf %48, %51 : vector<8x8xf32>
    %53 = math.exp %52 : vector<8x8xf32>
    %cst_27 = arith.constant dense<0.000000e+00> : vector<8xf32>
    %54 = vector.multi_reduction <add>, %53, %cst_27 [1] : vector<8x8xf32> to vector<8xf32>
    %55 = vector.shape_cast %54 : vector<8xf32> to vector<8x1xf32>
    %56 = tpu.reciprocal %55 {approx = true} : vector<8x1xf32> -> vector<8x1xf32>
    %57 = arith.truncf %53 : vector<8x8xf32> to vector<8x8xbf16>
    %cst_28 = arith.constant dense<0.000000e+00> : vector<8x8xf32>
    %58 = tpu.matmul %57, %47, %cst_28 {dimension_numbers = #tpu.dot_dimension_numbers<[1], [0], [0], [1], [0, 0, 1, 1], [], []>} : vector<8x8xbf16>, vector<8x8xbf16>, vector<8x8xf32> -> vector<8x8xf32>
    %59 = vector.broadcast %56 : vector<8x1xf32> to vector<8x8xf32>
    %60 = arith.mulf %58, %59 : vector<8x8xf32>
    %61 = arith.truncf %60 : vector<8x8xf32> to vector<8x8xbf16>
    %c0_29 = arith.constant 0 : index
    %c0_30 = arith.constant 0 : index
    %62 = vector.load %arg19[%c0_29, %c0_30] : memref<8x32xbf16, #tpu.memory_space<vmem>>, vector<8x8xbf16>
    tpu.vector_store %arg19[%c0_29, %c0_30], %61 {strides = array<i32>} : memref<8x32xbf16, #tpu.memory_space<vmem>>, vector<8x8xbf16>,
    %63 = vector.extract_strided_slice %32 {offsets = [0, 8], sizes = [8, 8], strides = [1, 1]} : vector<8x32xbf16> to vector<8x8xbf16>
    %64 = vector.extract_strided_slice %38 {offsets = [0, 8], sizes = [8, 8], strides = [1, 1]} : vector<8x32xbf16> to vector<8x8xbf16>
    %65 = vector.extract_strided_slice %44 {offsets = [0, 8], sizes = [8, 8], strides = [1, 1]} : vector<8x32xbf16> to vector<8x8xbf16>
    %cst_31 = arith.constant dense<0.000000e+00> : vector<8x8xf32>
    %66 = tpu.matmul %63, %64, %cst_31 {dimension_numbers = #tpu.dot_dimension_numbers<[1], [1], [0], [0], [0, 0, 1, 0], [], []>} : vector<8x8xbf16>, vector<8x8xbf16>, vector<8x8xf32> -> vector<8x8xf32>
    %cst_32 = arith.constant dense<0xFF800000> : vector<8xf32>
    %67 = vector.multi_reduction <maximumf>, %66, %cst_32 [1] : vector<8x8xf32> to vector<8xf32>
    %68 = vector.shape_cast %67 : vector<8xf32> to vector<8x1xf32>
    %69 = vector.broadcast %68 : vector<8x1xf32> to vector<8x8xf32>
    %70 = arith.subf %66, %69 : vector<8x8xf32>
    %71 = math.exp %70 : vector<8x8xf32>
    %cst_33 = arith.constant dense<0.000000e+00> : vector<8xf32>
    %72 = vector.multi_reduction <add>, %71, %cst_33 [1] : vector<8x8xf32> to vector<8xf32>
    %73 = vector.shape_cast %72 : vector<8xf32> to vector<8x1xf32>
    %74 = tpu.reciprocal %73 {approx = true} : vector<8x1xf32> -> vector<8x1xf32>
    %75 = arith.truncf %71 : vector<8x8xf32> to vector<8x8xbf16>
    %cst_34 = arith.constant dense<0.000000e+00> : vector<8x8xf32>
    %76 = tpu.matmul %75, %65, %cst_34 {dimension_numbers = #tpu.dot_dimension_numbers<[1], [0], [0], [1], [0, 0, 1, 1], [], []>} : vector<8x8xbf16>, vector<8x8xbf16>, vector<8x8xf32> -> vector<8x8xf32>
    %77 = vector.broadcast %74 : vector<8x1xf32> to vector<8x8xf32>
    %78 = arith.mulf %76, %77 : vector<8x8xf32>
    %79 = arith.truncf %78 : vector<8x8xf32> to vector<8x8xbf16>
    %c0_35 = arith.constant 0 : index
    %c8 = arith.constant 8 : index
    %80 = vector.load %arg19[%c0_35, %c8] : memref<8x32xbf16, #tpu.memory_space<vmem>>, vector<8x8xbf16>
    tpu.vector_store %arg19[%c0_35, %c8], %79 {strides = array<i32>} : memref<8x32xbf16, #tpu.memory_space<vmem>>, vector<8x8xbf16>,
    %81 = vector.extract_strided_slice %32 {offsets = [0, 16], sizes = [8, 8], strides = [1, 1]} : vector<8x32xbf16> to vector<8x8xbf16>
    %82 = vector.extract_strided_slice %38 {offsets = [0, 16], sizes = [8, 8], strides = [1, 1]} : vector<8x32xbf16> to vector<8x8xbf16>
    %83 = vector.extract_strided_slice %44 {offsets = [0, 16], sizes = [8, 8], strides = [1, 1]} : vector<8x32xbf16> to vector<8x8xbf16>
    %cst_36 = arith.constant dense<0.000000e+00> : vector<8x8xf32>
    %84 = tpu.matmul %81, %82, %cst_36 {dimension_numbers = #tpu.dot_dimension_numbers<[1], [1], [0], [0], [0, 0, 1, 0], [], []>} : vector<8x8xbf16>, vector<8x8xbf16>, vector<8x8xf32> -> vector<8x8xf32>
    %cst_37 = arith.constant dense<0xFF800000> : vector<8xf32>
    %85 = vector.multi_reduction <maximumf>, %84, %cst_37 [1] : vector<8x8xf32> to vector<8xf32>
    %86 = vector.shape_cast %85 : vector<8xf32> to vector<8x1xf32>
    %87 = vector.broadcast %86 : vector<8x1xf32> to vector<8x8xf32>
    %88 = arith.subf %84, %87 : vector<8x8xf32>
    %89 = math.exp %88 : vector<8x8xf32>
    %cst_38 = arith.constant dense<0.000000e+00> : vector<8xf32>
    %90 = vector.multi_reduction <add>, %89, %cst_38 [1] : vector<8x8xf32> to vector<8xf32>
    %91 = vector.shape_cast %90 : vector<8xf32> to vector<8x1xf32>
    %92 = tpu.reciprocal %91 {approx = true} : vector<8x1xf32> -> vector<8x1xf32>
    %93 = arith.truncf %89 : vector<8x8xf32> to vector<8x8xbf16>
    %cst_39 = arith.constant dense<0.000000e+00> : vector<8x8xf32>
    %94 = tpu.matmul %93, %83, %cst_39 {dimension_numbers = #tpu.dot_dimension_numbers<[1], [0], [0], [1], [0, 0, 1, 1], [], []>} : vector<8x8xbf16>, vector<8x8xbf16>, vector<8x8xf32> -> vector<8x8xf32>
    %95 = vector.broadcast %92 : vector<8x1xf32> to vector<8x8xf32>
    %96 = arith.mulf %94, %95 : vector<8x8xf32>
    %97 = arith.truncf %96 : vector<8x8xf32> to vector<8x8xbf16>
    %c0_40 = arith.constant 0 : index
    %c16 = arith.constant 16 : index
    %98 = vector.load %arg19[%c0_40, %c16] : memref<8x32xbf16, #tpu.memory_space<vmem>>, vector<8x8xbf16>
    tpu.vector_store %arg19[%c0_40, %c16], %97 {strides = array<i32>} : memref<8x32xbf16, #tpu.memory_space<vmem>>, vector<8x8xbf16>,
    %99 = vector.extract_strided_slice %32 {offsets = [0, 24], sizes = [8, 8], strides = [1, 1]} : vector<8x32xbf16> to vector<8x8xbf16>
    %100 = vector.extract_strided_slice %38 {offsets = [0, 24], sizes = [8, 8], strides = [1, 1]} : vector<8x32xbf16> to vector<8x8xbf16>
    %101 = vector.extract_strided_slice %44 {offsets = [0, 24], sizes = [8, 8], strides = [1, 1]} : vector<8x32xbf16> to vector<8x8xbf16>
    %cst_41 = arith.constant dense<0.000000e+00> : vector<8x8xf32>
    %102 = tpu.matmul %99, %100, %cst_41 {dimension_numbers = #tpu.dot_dimension_numbers<[1], [1], [0], [0], [0, 0, 1, 0], [], []>} : vector<8x8xbf16>, vector<8x8xbf16>, vector<8x8xf32> -> vector<8x8xf32>
    %cst_42 = arith.constant dense<0xFF800000> : vector<8xf32>
    %103 = vector.multi_reduction <maximumf>, %102, %cst_42 [1] : vector<8x8xf32> to vector<8xf32>
    %104 = vector.shape_cast %103 : vector<8xf32> to vector<8x1xf32>
    %105 = vector.broadcast %104 : vector<8x1xf32> to vector<8x8xf32>
    %106 = arith.subf %102, %105 : vector<8x8xf32>
    %107 = math.exp %106 : vector<8x8xf32>
    %cst_43 = arith.constant dense<0.000000e+00> : vector<8xf32>
    %108 = vector.multi_reduction <add>, %107, %cst_43 [1] : vector<8x8xf32> to vector<8xf32>
    %109 = vector.shape_cast %108 : vector<8xf32> to vector<8x1xf32>
    %110 = tpu.reciprocal %109 {approx = true} : vector<8x1xf32> -> vector<8x1xf32>
    %111 = arith.truncf %107 : vector<8x8xf32> to vector<8x8xbf16>
    %cst_44 = arith.constant dense<0.000000e+00> : vector<8x8xf32>
    %112 = tpu.matmul %111, %101, %cst_44 {dimension_numbers = #tpu.dot_dimension_numbers<[1], [0], [0], [1], [0, 0, 1, 1], [], []>} : vector<8x8xbf16>, vector<8x8xbf16>, vector<8x8xf32> -> vector<8x8xf32>
    %113 = vector.broadcast %110 : vector<8x1xf32> to vector<8x8xf32>
    %114 = arith.mulf %112, %113 : vector<8x8xf32>
    %115 = arith.truncf %114 : vector<8x8xf32> to vector<8x8xbf16>
    %c0_45 = arith.constant 0 : index
    %c24 = arith.constant 24 : index
    %116 = vector.load %arg19[%c0_45, %c24] : memref<8x32xbf16, #tpu.memory_space<vmem>>, vector<8x8xbf16>
    tpu.vector_store %arg19[%c0_45, %c24], %115 {strides = array<i32>} : memref<8x32xbf16, #tpu.memory_space<vmem>>, vector<8x8xbf16>,
    %c0_46 = arith.constant 0 : index
    %c0_47 = arith.constant 0 : index
    %117 = vector.load %arg19[%c0_46, %c0_47] : memref<8x32xbf16, #tpu.memory_space<vmem>>, vector<8x32xbf16>
    %c0_48 = arith.constant 0 : index
    %c0_49 = arith.constant 0 : index
    %118 = vector.load %arg10[%c0_48, %c0_49] : memref<32x32xbf16, #tpu.memory_space<vmem>>, vector<32x32xbf16>
    %cst_50 = arith.constant dense<0.000000e+00> : vector<8x32xf32>
    %119 = tpu.matmul %117, %118, %cst_50 {dimension_numbers = #tpu.dot_dimension_numbers<[1], [0], [0], [1], [0, 0, 1, 1], [], []>} : vector<8x32xbf16>, vector<32x32xbf16>, vector<8x32xf32> -> vector<8x32xf32>
    %120 = arith.addf %1, %119 : vector<8x32xf32>
    %c0_51 = arith.constant 0 : index
    %c0_52 = arith.constant 0 : index
    %121 = vector.load %arg11[%c0_51, %c0_52] : memref<1x32xf32, #tpu.memory_space<vmem>>, vector<1x32xf32>
    %122 = vector.broadcast %121 : vector<1x32xf32> to vector<8x32xf32>
    %123 = arith.addf %120, %122 : vector<8x32xf32>
    %c0_53 = arith.constant 0 : index
    %c0_54 = arith.constant 0 : index
    %124 = vector.load %arg12[%c0_53, %c0_54] : memref<1x32xf32, #tpu.memory_space<vmem>>, vector<1x32xf32>
    %c0_55 = arith.constant 0 : index
    %c0_56 = arith.constant 0 : index
    %125 = vector.load %arg13[%c0_55, %c0_56] : memref<1x32xf32, #tpu.memory_space<vmem>>, vector<1x32xf32>
    %cst_57 = arith.constant dense<0.000000e+00> : vector<8xf32>
    %126 = vector.multi_reduction <add>, %123, %cst_57 [1] : vector<8x32xf32> to vector<8xf32>
    %127 = vector.shape_cast %126 : vector<8xf32> to vector<8x1xf32>
    %cst_58 = arith.constant 3.200000e+01 : f32
    %128 = vector.broadcast %cst_58 : f32 to vector<8x1xf32>
    %129 = arith.divf %127, %128 : vector<8x1xf32>
    %130 = vector.broadcast %129 : vector<8x1xf32> to vector<8x32xf32>
    %131 = arith.subf %123, %130 : vector<8x32xf32>
    %132 = arith.mulf %131, %131 : vector<8x32xf32>
    %cst_59 = arith.constant dense<0.000000e+00> : vector<8xf32>
    %133 = vector.multi_reduction <add>, %132, %cst_59 [1] : vector<8x32xf32> to vector<8xf32>
    %134 = vector.shape_cast %133 : vector<8xf32> to vector<8x1xf32>
    %cst_60 = arith.constant 3.200000e+01 : f32
    %135 = vector.broadcast %cst_60 : f32 to vector<8x1xf32>
    %136 = arith.divf %134, %135 : vector<8x1xf32>
    %137 = vector.broadcast %129 : vector<8x1xf32> to vector<8x32xf32>
    %138 = arith.subf %123, %137 : vector<8x32xf32>
    %cst_61 = arith.constant 9.99999974E-6 : f32
    %139 = vector.broadcast %cst_61 : f32 to vector<8x1xf32>
    %140 = arith.addf %136, %139 : vector<8x1xf32>
    %141 = math.rsqrt %140 : vector<8x1xf32>
    %142 = vector.broadcast %141 : vector<8x1xf32> to vector<8x32xf32>
    %143 = arith.mulf %138, %142 : vector<8x32xf32>
    %144 = vector.broadcast %124 : vector<1x32xf32> to vector<8x32xf32>
    %145 = arith.mulf %143, %144 : vector<8x32xf32>
    %146 = vector.broadcast %125 : vector<1x32xf32> to vector<8x32xf32>
    %147 = arith.addf %145, %146 : vector<8x32xf32>
    %148 = arith.truncf %147 : vector<8x32xf32> to vector<8x32xbf16>
    %cst_62 = arith.constant 0.000000e+00 : f32
    %149 = vector.broadcast %cst_62 : f32 to vector<8x32xf32>
    %c0_63 = arith.constant 0 : index
    %c0_64 = arith.constant 0 : index
    %150 = vector.load %arg14[%c0_63, %c0_64] : memref<32x128xbf16, #tpu.memory_space<vmem>>, vector<32x128xbf16>
    %cst_65 = arith.constant dense<0.000000e+00> : vector<8x128xf32>
    %151 = tpu.matmul %148, %150, %cst_65 {dimension_numbers = #tpu.dot_dimension_numbers<[1], [0], [0], [1], [0, 0, 1, 1], [], []>} : vector<8x32xbf16>, vector<32x128xbf16>, vector<8x128xf32> -> vector<8x128xf32>
    %c0_66 = arith.constant 0 : index
    %c0_67 = arith.constant 0 : index
    %152 = vector.load %arg15[%c0_66, %c0_67] : memref<1x128xf32, #tpu.memory_space<vmem>>, vector<1x128xf32>
    %153 = vector.broadcast %152 : vector<1x128xf32> to vector<8x128xf32>
    %154 = arith.addf %151, %153 : vector<8x128xf32>
    %cst_68 = arith.constant 1.702000e+00 : f32
    %155 = vector.broadcast %cst_68 : f32 to vector<8x128xf32>
    %156 = arith.mulf %155, %154 : vector<8x128xf32>
    %157 = arith.negf %156 : vector<8x128xf32>
    %158 = math.exp %157 : vector<8x128xf32>
    %cst_69 = arith.constant 1.000000e+00 : f32
    %159 = vector.broadcast %cst_69 : f32 to vector<8x128xf32>
    %160 = arith.addf %159, %158 : vector<8x128xf32>
    %161 = arith.divf %159, %160 : vector<8x128xf32>
    %162 = arith.mulf %154, %161 : vector<8x128xf32>
    %163 = arith.truncf %162 : vector<8x128xf32> to vector<8x128xbf16>
    %c0_70 = arith.constant 0 : index
    %c0_71 = arith.constant 0 : index
    %164 = vector.load %arg16[%c0_70, %c0_71] : memref<128x32xbf16, #tpu.memory_space<vmem>>, vector<128x32xbf16>
    %cst_72 = arith.constant dense<0.000000e+00> : vector<8x32xf32>
    %165 = tpu.matmul %163, %164, %cst_72 {dimension_numbers = #tpu.dot_dimension_numbers<[1], [0], [0], [1], [0, 0, 1, 1], [], []>} : vector<8x128xbf16>, vector<128x32xbf16>, vector<8x32xf32> -> vector<8x32xf32>
    %166 = arith.addf %149, %165 : vector<8x32xf32>
    %167 = arith.addf %123, %166 : vector<8x32xf32>
    %c0_73 = arith.constant 0 : index
    %c0_74 = arith.constant 0 : index
    %168 = vector.load %arg17[%c0_73, %c0_74] : memref<1x32xf32, #tpu.memory_space<vmem>>, vector<1x32xf32>
    %169 = vector.broadcast %168 : vector<1x32xf32> to vector<8x32xf32>
    %170 = arith.addf %167, %169 : vector<8x32xf32>
    %c0_75 = arith.constant 0 : index
    %c0_76 = arith.constant 0 : index
    %c0_77 = arith.constant 0 : index
    %171 = vector.load %arg18[%c0_75, %c0_76, %c0_77] : memref<1x8x32xf32, #tpu.memory_space<vmem>>, vector<1x8x32xf32>
    %172 = vector.shape_cast %171 : vector<1x8x32xf32> to vector<8x32xf32>
    %173 = vector.shape_cast %170 : vector<8x32xf32> to vector<1x8x32xf32>
    tpu.vector_store %arg18[%c0_75, %c0_76, %c0_77], %173 {strides = array<i32>} : memref<1x8x32xf32, #tpu.memory_space<vmem>>, vector<1x8x32xf32>,
    return
  }
  func.func @transform_0(%arg0: i32) -> (i32, i32, i32) {
    %c0_i32 = arith.constant 0 : i32
    %c0_i32_0 = arith.constant 0 : i32
    %c0_i32_1 = arith.constant 0 : i32
    return %arg0, %c0_i32, %c0_i32_0 : i32, i32, i32
  }
  func.func @transform_1(%arg0: i32) -> (i32, i32) {
    %c0_i32 = arith.constant 0 : i32
    %c0_i32_0 = arith.constant 0 : i32
    %c0_i32_1 = arith.constant 0 : i32
    return %c0_i32, %c0_i32_0 : i32, i32
  }
  func.func @transform_2(%arg0: i32) -> (i32, i32) {
    %c0_i32 = arith.constant 0 : i32
    %c0_i32_0 = arith.constant 0 : i32
    %c0_i32_1 = arith.constant 0 : i32
    return %c0_i32, %c0_i32_0 : i32, i32
  }
  func.func @transform_3(%arg0: i32) -> (i32, i32) {
    %c0_i32 = arith.constant 0 : i32
    %c0_i32_0 = arith.constant 0 : i32
    %c0_i32_1 = arith.constant 0 : i32
    return %c0_i32, %c0_i32_0 : i32, i32
  }
  func.func @transform_4(%arg0: i32) -> (i32, i32) {
    %c0_i32 = arith.constant 0 : i32
    %c0_i32_0 = arith.constant 0 : i32
    %c0_i32_1 = arith.constant 0 : i32
    return %c0_i32, %c0_i32_0 : i32, i32
  }
  func.func @transform_5(%arg0: i32) -> (i32, i32) {
    %c0_i32 = arith.constant 0 : i32
    %c0_i32_0 = arith.constant 0 : i32
    %c0_i32_1 = arith.constant 0 : i32
    return %c0_i32, %c0_i32_0 : i32, i32
  }
  func.func @transform_6(%arg0: i32) -> (i32, i32) {
    %c0_i32 = arith.constant 0 : i32
    %c0_i32_0 = arith.constant 0 : i32
    %c0_i32_1 = arith.constant 0 : i32
    return %c0_i32, %c0_i32_0 : i32, i32
  }
  func.func @transform_7(%arg0: i32) -> (i32, i32) {
    %c0_i32 = arith.constant 0 : i32
    %c0_i32_0 = arith.constant 0 : i32
    %c0_i32_1 = arith.constant 0 : i32
    return %c0_i32, %c0_i32_0 : i32, i32
  }
  func.func @transform_8(%arg0: i32) -> (i32, i32) {
    %c0_i32 = arith.constant 0 : i32
    %c0_i32_0 = arith.constant 0 : i32
    %c0_i32_1 = arith.constant 0 : i32
    return %c0_i32, %c0_i32_0 : i32, i32
  }
  func.func @transform_9(%arg0: i32) -> (i32, i32) {
    %c0_i32 = arith.constant 0 : i32
    %c0_i32_0 = arith.constant 0 : i32
    %c0_i32_1 = arith.constant 0 : i32
    return %c0_i32, %c0_i32_0 : i32, i32
  }
  func.func @transform_10(%arg0: i32) -> (i32, i32) {
    %c0_i32 = arith.constant 0 : i32
    %c0_i32_0 = arith.constant 0 : i32
    %c0_i32_1 = arith.constant 0 : i32
    return %c0_i32, %c0_i32_0 : i32, i32
  }
  func.func @transform_11(%arg0: i32) -> (i32, i32) {
    %c0_i32 = arith.constant 0 : i32
    %c0_i32_0 = arith.constant 0 : i32
    %c0_i32_1 = arith.constant 0 : i32
    return %c0_i32, %c0_i32_0 : i32, i32
  }
  func.func @transform_12(%arg0: i32) -> (i32, i32) {
    %c0_i32 = arith.constant 0 : i32
    %c0_i32_0 = arith.constant 0 : i32
    %c0_i32_1 = arith.constant 0 : i32
    return %c0_i32, %c0_i32_0 : i32, i32
  }
  func.func @transform_13(%arg0: i32) -> (i32, i32) {
    %c0_i32 = arith.constant 0 : i32
    %c0_i32_0 = arith.constant 0 : i32
    %c0_i32_1 = arith.constant 0 : i32
    return %c0_i32, %c0_i32_0 : i32, i32
  }
  func.func @transform_14(%arg0: i32) -> (i32, i32) {
    %c0_i32 = arith.constant 0 : i32
    %c0_i32_0 = arith.constant 0 : i32
    %c0_i32_1 = arith.constant 0 : i32
    return %c0_i32, %c0_i32_0 : i32, i32
  }
  func.func @transform_15(%arg0: i32) -> (i32, i32) {
    %c0_i32 = arith.constant 0 : i32
    %c0_i32_0 = arith.constant 0 : i32
    %c0_i32_1 = arith.constant 0 : i32
    return %c0_i32, %c0_i32_0 : i32, i32
  }
  func.func @transform_16(%arg0: i32) -> (i32, i32) {
    %c0_i32 = arith.constant 0 : i32
    %c0_i32_0 = arith.constant 0 : i32
    %c0_i32_1 = arith.constant 0 : i32
    return %c0_i32, %c0_i32_0 : i32, i32
  }
  func.func @transform_17(%arg0: i32) -> (i32, i32, i32) {
    %c0_i32 = arith.constant 0 : i32
    %c0_i32_0 = arith.constant 0 : i32
    %c0_i32_1 = arith.constant 0 : i32
    return %arg0, %c0_i32, %c0_i32_0 : i32, i32, i32
  }
}

</mosaic_0001>

<bundles_post_ra>
// kernel: tpu_custom_call.1
= control target key start
LH: loop header
LB: loop body
LE: loop exit
PB: predicated region body
PF: predicated region fallthrough
CT: control target
= control target key end

     0   :  { %s2436_s0 = inlined_call_operand.vmem [shape: f32[2,8,32], index: 0, kind: input, shape index: {}]   ;;  %s2437_s1 = inlined_call_operand.vmem [shape: f32[1,32], index: 1, kind: input, shape index: {}]   ;;  %s2438_s2 = inlined_call_operand.vmem [shape: f32[1,32], index: 2, kind: input, shape index: {}]   ;;  %s2439_s3 = inlined_call_operand.vmem [shape: bf16[32,32], index: 3, kind: input, shape index: {}]   ;;  %s2440_s4 = inlined_call_operand.vmem [shape: f32[1,32], index: 4, kind: input, shape index: {}]   ;;  %s2441_s5 = inlined_call_operand.vmem [shape: bf16[32,32], index: 5, kind: input, shape index: {}]   ;;  %s2442_s6 = inlined_call_operand.vmem [shape: f32[1,32], index: 6, kind: input, shape index: {}]   ;;  %s2443_s7 = inlined_call_operand.vmem [shape: bf16[32,32], index: 7, kind: input, shape index: {}]   ;;  %s2444_s8 = inlined_call_operand.vmem [shape: f32[1,32], index: 8, kind: input, shape index: {}]   ;;  %s2445_s9 = inlined_call_operand.vmem [shape: bf16[32,32], index: 9, kind: input, shape index: {}]   ;;  %s2446_s10 = inlined_call_operand.vmem [shape: f32[1,32], index: 10, kind: input, shape index: {}]   ;;  %s2447_s11 = inlined_call_operand.vmem [shape: f32[1,32], index: 11, kind: input, shape index: {}]   ;;  %s2448_s12 = inlined_call_operand.vmem [shape: f32[1,32], index: 12, kind: input, shape index: {}]   ;;  %s2449_s13 = inlined_call_operand.hbm [shape: bf16[32,128], index: 13, kind: input, shape index: {}]   ;;  %s2450_s14 = inlined_call_operand.vmem [shape: f32[1,128], index: 14, kind: input, shape index: {}]   ;;  %s2451_s15 = inlined_call_operand.vmem [shape: bf16[128,32], index: 15, kind: input, shape index: {}]   ;;  %s2452_s16 = inlined_call_operand.vmem [shape: f32[1,32], index: 16, kind: input, shape index: {}]   ;;  %s2453_s17 = inlined_call_operand.hbm [shape: f32[2,8,32], index: 17, kind: output, shape index: {}]  }
   0x1   :  { %2460 = sst [smem:[#allocation15_spill]] %s2436_s0 }
   0x2   :  { %2461 = sst [smem:[#allocation16_spill]] %s2437_s1 }
   0x3   :  { %22 = vsyncpa [#allocation4], 0 }
   0x4   :  { %23 = vsyncpa [#allocation5], 0 }
   0x5   :  { %25 = vsyncpa [#allocation5 + $0x1], 0  ;;  %s2134_s24 = smov 0   ;;  %s2136_s25 = smov 0  }
   0x6   :  { %s2138_s26 = smov 0   ;;  %s2140_s27 = smov 0  }
   0x7 LB: > { %2462 = sst [smem:[#allocation9_spill]] %s2018_s24  ;;  %s2155_s28 = sadd.s32 4294967295, %s2030_s27   ;;  %s2030_s27 = sphi %s2140_s27, %s2477_s27   ;;  %s2026_s26 = sphi %s2138_s26, %s2482_s26   ;;  %s2022_s25 = sphi %s2136_s25, %s2481_s25   ;;  %s2018_s24 = sphi %s2134_s24, %s2480_s24  }
   0x8   : > { %2463 = sst [smem:[#allocation10_spill]] %s2026_s26  ;;  %s1630_s29 = sadd.s32 4294967294, %s2030_s27  }
   0x9   : > { %2464 = sst [smem:[#allocation11_spill]] %s2030_s27  ;;  %s2159_s0 = sadd.s32 1, %s2030_s27  }
   0xa   : > { %2465 = sst [smem:[#allocation12_spill]] %s2159_s0  ;;  %s400_s30 = sadd.s32 1, %s2026_s26 }
   0xb   : > { %s397_s18 = ssub.s32 %s2030_s27, %s2159_s0  ;;  %p410_p0 = scmp.ne.s32.totalorder %s2026_s26, %s2022_s25 }
   0xc   : > { %p398_p1 = scmp.eq.s32.totalorder %s397_s18, 0  ;;  %p411_p2 = scmp.eq.s32.totalorder %s2155_s28, 1 }
   0xd   : > { %p416_p3 = scmp.ne.s32.totalorder %s2022_s25, %s2018_s24  ;;  %p417_p4 = scmp.eq.s32.totalorder %s1630_s29, 1 }
   0xe   : > { %s2170_s19 = scalar_select %p398_p1, %s2026_s26, %s400_s30  }
   0xf   : > { %p2172_p5 = por %p411_p2, %p410_p0  ;;  %p2176_p6 = por %p417_p4, %p416_p3 }
  0x10   : > { %2466 = sst [smem:[#allocation13_spill]] %s2170_s19  ;;  %p1631_p7 = scmp.ge.s32.totalorder %s2030_s27, 1 }
  0x11   : > { %s2468_s20 = scalar_select %p2176_p6, 1, 0 }
  0x12   : > { %p424_p8 = scmp.lt.s32.totalorder %s2030_s27, 3  ;;  %p1852_p9 = scmp.eq.s32.totalorder %s2155_s28, 0 }
  0x13   : > { %2469 = sst [smem:[#allocation14_spill]] %s2468_s20  ;;  %s2032_s22 = smov [#allocation3]  }
  0x14   : > { %p2183_p10 = pnand %p1631_p7, %p424_p8  ;;  %s472_s23 = sshll.u32 %s2032_s22, 4  ;;  %s473_s23 = int_to_ptr.vmem [resolvable:$true] %s472_s23 }
  0x15   : > { %s1951_s29 = scalar_lea.vmem %s473_s23, 256  ;;  %p1959_p3 = scmp.lt.s32.totalorder %s473_s23, %s473_s23 }
  0x16   : > { %p1844_p11 = pneg %p2183_p10  ;;  %p1952_p0 = scmp.ne.s32.totalorder %s473_s23, %s1951_s29 }
  0x17   : > { %p1960_p4 = scmp.lt.s32.totalorder %s1951_s29, %s1951_s29 }
  0x18   : > { %p1845_p12 = pnand %p1852_p9, %p1844_p11 }
  0x19   : > { %p1961_p6 = por %p1960_p4, %p1959_p3 }
  0x1a   : > { %p1942_p13 = pneg %p1845_p12 }
  0x1c   : > { %p1954_p1 = pnand %p1952_p0, %p1942_p13 }
  0x1e   : > { %p1955_p2 = pneg %p1954_p1 }
  0x20   : > { %p1962_p7 = pnand %p1961_p6, %p1955_p2 }
  0x22   : > { %1965 = shalt.err (!%p1962_p7)
}
  0x23   : > { %s2033_s30 = smov 64   ;;  %s2034_s18 = smov 4  }
  0x24   : > { %1847 = dma.hbm_to_vmem [thread:$0]  (!%p1845_p12), %s2449_s13, 256, %s473_s23, [#allocation4], %s2033_s30, %s2033_s30, %s2034_s18  }
  0x25   : > { %504 = sbr.rel (%p2183_p10) target bundleno = 2328 (0x918), region = 88 }
  0x2a   : > { %2009 = dma.done.wait (%p1852_p9), [#allocation4], 256  }
  0x2b   : > { %2011 = vsyncadd (%p1852_p9), [#allocation4], 4294967040  ;;  %p555_p8 = scmp.lt.s32.totalorder %s2155_s28, 1  ;;  %s2471_s24 = sld [smem:[#allocation15_spill]]  ;;  %vm563_vm0 = vcmask 261120   ;;  %v1898_v7 = vld [vmem:[%s2439_s3 + $0x8] sm:$0xff]  }
  0x2c   : > { %v2035_v8 = vmov 0.0   ;;  %vm2036_vm1 = vmmov 0   ;;  %v1899_v9 = vld [vmem:[%s2439_s3] sm:$0xff]   ;;  %s2472_s21 = sld [smem:[#allocation16_spill]]  ;;  %v1900_v19 = vld [vmem:[%s2441_s5 + $0x8] sm:$0xff]   ;;  %vm788_vm2 = vcmask 64512  }
  0x2d   : > { %s556_s22 = scalar_select %p555_p8, %s2155_s28, 1  ;;  %1730 = vmatprep.subr.bf16.mxu0 %v2035_v8  ;;  %1734 = vmatprep.mubr.msk.bf16.mxu0 %vm2036_vm1, %v2035_v8  ;;  %v1639_v16 = vld [vmem:[%s2438_s2] ss:$0 sm:$0xff]  ;;  %v1902_v22 = vld [vmem:[%s2443_s7 + $0x8] sm:$0xff]   ;;  %vm849_vm3 = vcmask 1043456   ;;  %vm895_vm4 = vcmask 60416  }
  0x2e   : > { %1731 = vmatpush3.bf16.msra.mxu0 %v1898_v7  ;;  %1754 = vmatprep.subr.bf16.mxu1 %v2035_v8  ;;  %v1901_v21 = vld [vmem:[%s2441_s5] sm:$0xff]   ;;  %s2037_s18 = smov 112   ;;  %s2039_s19 = smov 104   ;;  %vm1017_vm5 = vcmask 126016   ;;  %vm1136_vm6 = vcmask 191616   ;;  %vm1255_vm7 = vcmask 257216  }
  0x2f   : > { %s1637_s29 = sshll.u32 %s556_s22, 3  ;;  %1732 = vmatprep.subr.bf16.mxu0 %v2035_v8  ;;  %1756 = vmatprep.mubr.msk.bf16.mxu1 %vm2036_vm1, %v2035_v8  ;;  %v1903_v23 = vld [vmem:[%s2443_s7] sm:$0xff]   ;;  %s2038_s22 = smov 120  }
  0x30   : > { %v1644_v28 = vld [vmem:[%s2442_s6] ss:$0 sm:$0xff]  ;;  %s2041_s23 = smov 16   ;;  %s2042_s30 = smov 24  }
  0x31   : > { %s558_s27 = scalar_lea.vmem %s2471_s24, %s1637_s29  ;;  %v1640_v29 = vld [vmem:[%s2440_s4] ss:$0 sm:$0xff]  ;;  %s2040_s24 = smov 8  }
  0x32   : > { %v2205_v0 = vld [vmem:[%s558_s27] sm:$0xff]  ;;  %1733 = vmatpush3.bf16.msra.mxu0 %v1899_v9 }
  0x33   : > { %v564_v1 = vsel %vm563_vm0, %v2205_v0, 0.0  ;;  %1738 = vmatprep.subr.bf16.mxu0 %v2035_v8  ;;  %v1638_v14 = vld [vmem:[%s2472_s21] ss:$0 sm:$0xff] }
  0x34   : > { %565 = vadd.xlane.f32.xlu0 %v564_v1  ;;  %v1648_v38 = vld [vmem:[%s2444_s8] ss:$0 sm:$0xff] }
  0xbd   : > { %v566_v2 = vpop.xlane.xlu0 %565 }
  0xbe   : > { %v568_v3 = vmul.f32 0.03125, %v566_v2 }
  0xc0   : > { %v569_v4 = vsub.f32 %v2205_v0, %v568_v3 }
  0xc2   : > { %v570_v5 = vmul.f32 %v569_v4, %v569_v4 }
  0xc4   : > { %v571_v6 = vsel %vm563_vm0, %v570_v5, 0.0 }
  0xc5   : > { %572 = vadd.xlane.f32.xlu0 %v571_v6 }
 0x14e   : > { %v573_v10 = vpop.xlane.xlu0 %572 }
 0x14f   : > { %v574_v11 = vmul.f32 0.03125, %v573_v10 }
 0x151   : > { %v575_v12 = vadd.f32 1e-05, %v574_v11 }
 0x153   : > { %1916 = vrsqrt.f32 %v575_v12 }
 0x160   : > { %v1917_v13 = vpop.eup %1916 }
 0x161   : > { %v577_v15 = vmul.f32 %v1917_v13, %v569_v4 }
 0x163   : > { %v584_v17 = vmul.f32 %v1638_v14, %v577_v15 }
 0x165   : > { %v591_v18 = vadd.f32 %v1639_v16, %v584_v17 }
 0x167   : > { %v592_v20 = vpack.c.bf16 %v591_v18, %v591_v18 }
 0x169   : > { %1735 = vmatmul.mubr.msk.bf16.vlgmr.msra.gmra.mxu0 %vm563_vm0, %v592_v20 }
 0x16a   : > { %1739 = vmatpush3.bf16.msra.mxu0 %v1900_v19  ;;  %1742 = vmatprep.mubr.msk.bf16.mxu0 %vm2036_vm1, %v2035_v8 }
 0x16b   : > { %1740 = vmatprep.subr.bf16.mxu0 %v2035_v8 }
 0x16e   : > { %1741 = vmatpush3.bf16.msra.mxu0 %v1901_v21 }
 0x16f   : > { %1746 = vmatprep.subr.bf16.mxu0 %v2035_v8 }
 0x171   : > { %1743 = vmatmul.mubr.msk.bf16.vlgmr.msra.gmra.mxu0 %vm563_vm0, %v592_v20 }
 0x172   : > { %1747 = vmatpush3.bf16.msra.mxu0 %v1902_v22  ;;  %1750 = vmatprep.mubr.msk.bf16.mxu0 %vm2036_vm1, %v2035_v8 }
 0x173   : > { %1748 = vmatprep.subr.bf16.mxu0 %v2035_v8 }
 0x176   : > { %1749 = vmatpush3.bf16.msra.mxu0 %v1903_v23 }
 0x177   : > { %1760 = vmatprep.subr.bf16.mxu0 %v2035_v8 }
 0x179   : > { %1751 = vmatmul.mubr.msk.bf16.vlgmr.msra.gmra.mxu0 %vm563_vm0, %v592_v20 }
 0x17a   : > { %1762 = vmatprep.mubr.msk.bf16.mxu0 %vm2036_vm1, %v2035_v8 }
 0x229   : > { %v653_v24 = vpop.f32.mrf.mxu0 }
 0x22a   : > { %v654_v33 = vadd.f32 %v1640_v29, %v653_v24 }
 0x22b   : > { %v1736_v25 = vpop.f32.mrf.mxu0 }
 0x22c   : > { %v659_v39 = vpack.c.bf16 %v654_v33, %v654_v33 }
 0x22d   : > { %v656_v26 = vpop.f32.mrf.mxu0 }
 0x22f   : > { %v1737_v27 = vpop.f32.mrf.mxu0 }
 0x231   : > { %v717_v30 = vpop.f32.mrf.mxu0 }
 0x232   : > { %v718_v31 = vadd.f32 %v1644_v28, %v717_v30 }
 0x233   : > { %v1744_v32 = vpop.f32.mrf.mxu0 }
 0x234   : > { %v723_v34 = vpack.c.bf16 %v718_v31, %v718_v31 }
 0x235   : > { %v720_v35 = vpop.f32.mrf.mxu0 }
 0x236   : > { %1021 = vrot.lane.b32.xlu0 %v723_v34, %s2037_s18  ;;  %901 = vrot.lane.b32.xlu1 %v723_v34, %s2038_s22  ;;  %v793_v36 = vsel %vm788_vm2, %v723_v34, 0 }
 0x237   : > { %v1745_v37 = vpop.f32.mrf.mxu0  ;;  %1755 = vmatpush3.bf16.xpose.msra.mxu1 %v793_v36 }
 0x238   : > { %1766 = vmatprep.subr.bf16.mxu1 %v2035_v8 }
 0x239   : > { %v781_v40 = vpop.f32.mrf.mxu0 }
 0x23a   : > { %v782_v41 = vadd.f32 %v1648_v38, %v781_v40  ;;  %898 = vrot.lane.b32.xlu1 %v659_v39, %s2038_s22 }
 0x23b   : > { %v1752_v42 = vpop.f32.mrf.mxu0 }
 0x23c   : > { %v787_v43 = vpack.c.bf16 %v782_v41, %v782_v41 }
 0x23d   : > { %v784_v44 = vpop.f32.mrf.mxu0 }
 0x23e   : > { %1019 = vrot.lane.b32.xlu1 %v659_v39, %s2037_s18  ;;  %1757 = vmatmul.mubr.msk.bf16.vlgmr.msra.gmra.mxu1 %vm788_vm2, %v659_v39  ;;  %v851_v45 = vsel %vm849_vm3, %v787_v43, 0 }
 0x23f   : > { %v1753_v46 = vpop.f32.mrf.mxu0  ;;  %1761 = vmatpush3.bf16.msra.mxu0 %v851_v45  ;;  %1768 = vmatprep.mubr.msk.bf16.mxu1 %vm2036_vm1, %v2035_v8 }
 0x240   : > { %1772 = vmatprep.subr.bf16.mxu0 %v2035_v8 }
 0x242   : > { %1140 = vrot.lane.b32.xlu1 %v723_v34, %s2039_s19 }
 0x246   : > { %1138 = vrot.lane.b32.xlu1 %v659_v39, %s2039_s19 }
 0x2a8   : > { %v902_v47 = vpop.permute.xlu1 %901  ;;  %v1022_v50 = vpop.permute.xlu0 %1021 }
 0x2a9   : > { %v907_v48 = vsel %vm788_vm2, %v902_v47, 0  ;;  %v1027_v52 = vsel %vm788_vm2, %v1022_v50, 0 }
 0x2aa   : > { %1767 = vmatpush3.bf16.xpose.msra.mxu1 %v907_v48 }
 0x2ab   : > { %1778 = vmatprep.subr.bf16.mxu1 %v2035_v8 }
 0x2ac   : > { %v899_v49 = vpop.permute.xlu1 %898 }
 0x2b0   : > { %v1020_v51 = vpop.permute.xlu1 %1019 }
 0x2b1   : > { %1769 = vmatmul.mubr.msk.bf16.vlgmr.msra.gmra.mxu1 %vm788_vm2, %v899_v49 }
 0x2b2   : > { %1779 = vmatpush3.bf16.xpose.msra.mxu1 %v1027_v52  ;;  %1780 = vmatprep.mubr.msk.bf16.mxu1 %vm2036_vm1, %v2035_v8 }
 0x2b3   : > { %1790 = vmatprep.subr.bf16.mxu1 %v2035_v8 }
 0x2b4   : > { %v1141_v53 = vpop.permute.xlu1 %1140 }
 0x2b5   : > { %v1146_v54 = vsel %vm788_vm2, %v1141_v53, 0 }
 0x2b8   : > { %v1139_v55 = vpop.permute.xlu1 %1138 }
 0x2b9   : > { %1781 = vmatmul.mubr.msk.bf16.vlgmr.msra.gmra.mxu1 %vm788_vm2, %v1020_v51 }
 0x2ba   : > { %1791 = vmatpush3.bf16.xpose.msra.mxu1 %v1146_v54  ;;  %1792 = vmatprep.mubr.msk.bf16.mxu1 %vm2036_vm1, %v2035_v8 }
 0x2bb   : > { %1802 = vmatprep.subr.bf16.mxu1 %v2035_v8 }
 0x2c1   : > { %1793 = vmatmul.mubr.msk.bf16.vlgmr.msra.gmra.mxu1 %vm788_vm2, %v1139_v55 }
 0x2c2   : > { %1806 = vmatprep.mubr.msk.bf16.mxu1 %vm2036_vm1, %v2035_v8 }
 0x2fe   : > { %v829_v56 = vpop.f32.mrf.mxu1 }
 0x2ff   : > { %v835_v57 = vsel %vm788_vm2, %v829_v56, -inf }
 0x300   : > { %836 = vmax.xlane.f32.xlu1 %v835_v57  ;;  %v1758_v58 = vpop.f32.mrf.mxu1 }
 0x302   : > { %v832_v59 = vpop.f32.mrf.mxu1 }
 0x304   : > { %v1759_v60 = vpop.f32.mrf.mxu1 }
 0x311   : > { %1080 = vrot.lane.b32.xlu1 %v787_v43, %s2037_s18  ;;  %s552_s18 = sand.u32 1, %s2022_s25  }
 0x371   : > { %v943_v61 = vpop.f32.mrf.mxu1 }
 0x372   : > { %v949_v62 = vsel %vm788_vm2, %v943_v61, -inf }
 0x373   : > { %950 = vmax.xlane.f32.xlu0 %v949_v62  ;;  %v1770_v63 = vpop.f32.mrf.mxu1 }
 0x375   : > { %v946_v1 = vpop.f32.mrf.mxu1 }
 0x376   : > { %v1904_v1 = vld [vmem:[%s2445_s9 + $0x8] sm:$0xff]  }
 0x377   : > { %v1771_v2 = vpop.f32.mrf.mxu1  ;;  %1803 = vmatpush3.bf16.msra.mxu1 %v1904_v1 }
 0x378   : > { %1804 = vmatprep.subr.bf16.mxu1 %v2035_v8 }
 0x379   : > { %v1063_v3 = vpop.f32.mrf.mxu1 }
 0x37a   : > { %v1069_v4 = vsel %vm788_vm2, %v1063_v3, -inf }
 0x37b   : > { %v1782_v5 = vpop.f32.mrf.mxu1  ;;  %1070 = vmax.xlane.f32.xlu1 %v1069_v4  ;;  %v1905_v4 = vld [vmem:[%s2445_s9] sm:$0xff]  }
 0x37c   : > { %1805 = vmatpush3.bf16.msra.mxu1 %v1905_v4 }
 0x37d   : > { %v1066_v6 = vpop.f32.mrf.mxu1  ;;  %1818 = vmatprep.subr.bf16.mxu1 %v2035_v8 }
 0x37f   : > { %v1783_v7 = vpop.f32.mrf.mxu1 }
 0x381   : > { %v1182_v9 = vpop.f32.mrf.mxu1 }
 0x382   : > { %v1188_v10 = vsel %vm788_vm2, %v1182_v9, -inf }
 0x383   : > { %v1794_v11 = vpop.f32.mrf.mxu1  ;;  %1189 = vmax.xlane.f32.xlu1 %v1188_v10 }
 0x385   : > { %v1185_v12 = vpop.f32.mrf.mxu1 }
 0x387   : > { %v1795_v13 = vpop.f32.mrf.mxu1 }
 0x389   : > { %v837_v14 = vpop.xlane.xlu1 %836  ;;  %961 = vrot.lane.b32.xlu0 %v787_v43, %s2038_s22  ;;  %s1636_s22 = sshll.u32 %s552_s18, 3 }
 0x38a   : > { %v838_v15 = vsub.f32 %v829_v56, %v837_v14 }
 0x38c   : > { %v839_v16 = vmul.f32 1.442695, %v838_v15 }
 0x38d   : > { %v1081_v22 = vpop.permute.xlu1 %1080 }
 0x38e   : > { %1918 = vpow2.f32 %v839_v16  ;;  %v1086_v34 = vsel %vm849_vm3, %v1081_v22, 0 }
 0x394   : > { %1199 = vrot.lane.b32.xlu1 %v787_v43, %s2039_s19  ;;  %s1684_s19 = sshll.u32 %s2155_s28, 7  ;;  %s1546_s28 = scalar_lea.sflag [#allocation5], %s552_s18 }
 0x395   : > { %s2394_s21 = scalar_lea.hbm %s2453_s17, %s1684_s19 }
 0x39b   : > { %v1919_v17 = vpop.eup %1918 }
 0x39c   : > { %v845_v18 = vpack.c.bf16 %v1919_v17, %v1919_v17  ;;  %v841_v43 = vsel %vm788_vm2, %v1919_v17, 0.0 }
 0x39e   : > { %1763 = vmatmul.mubr.msk.bf16.vlgmr.msra.gmra.mxu0 %vm788_vm2, %v845_v18 }
 0x39f   : > { %1774 = vmatprep.mubr.msk.bf16.mxu0 %vm2036_vm1, %v2035_v8 }
 0x3fc   : > { %v951_v19 = vpop.xlane.xlu0 %950 }
 0x3fd   : > { %v952_v20 = vsub.f32 %v943_v61, %v951_v19 }
 0x3ff   : > { %v953_v21 = vmul.f32 1.442695, %v952_v20 }
 0x400   : > { %v962_v23 = vpop.permute.xlu0 %961 }
 0x401   : > { %1920 = vpow2.f32 %v953_v21  ;;  %v967_v24 = vsel %vm849_vm3, %v962_v23, 0  ;;  %v1666_v21 = vld [vmem:[%s2446_s10] ss:$0 sm:$0xff] }
 0x402   : > { %1773 = vmatpush3.bf16.msra.mxu0 %v967_v24 }
 0x403   : > { %1784 = vmatprep.subr.bf16.mxu0 %v2035_v8 }
 0x404   : > { %v1071_v25 = vpop.xlane.xlu1 %1070 }
 0x405   : > { %v1072_v26 = vsub.f32 %v1063_v3, %v1071_v25 }
 0x407   : > { %v1073_v27 = vmul.f32 1.442695, %v1072_v26 }
 0x409   : > { %1922 = vpow2.f32 %v1073_v27 }
 0x40c   : > { %v1190_v28 = vpop.xlane.xlu1 %1189 }
 0x40d   : > { %v1191_v29 = vsub.f32 %v1182_v9, %v1190_v28 }
 0x40e   : > { %v1921_v30 = vpop.eup %1920 }
 0x40f   : > { %v1192_v31 = vmul.f32 1.442695, %v1191_v29  ;;  %v955_v32 = vsel %vm788_vm2, %v1921_v30, 0.0  ;;  %v959_v33 = vpack.c.bf16 %v1921_v30, %v1921_v30 }
 0x410   : > { %956 = vadd.xlane.f32.xlu0 %v955_v32  ;;  %v1200_v36 = vpop.permute.xlu1 %1199 }
 0x411   : > { %1924 = vpow2.f32 %v1192_v31  ;;  %1775 = vmatmul.mubr.msk.bf16.vlgmr.msra.gmra.mxu0 %vm788_vm2, %v959_v33  ;;  %v1205_v39 = vsel %vm849_vm3, %v1200_v36, 0  ;;  %v1906_v33 = vld [vmem:[#allocation3 + $0x8] sm:$0xff]  }
 0x412   : > { %1785 = vmatpush3.bf16.msra.mxu0 %v1086_v34  ;;  %1786 = vmatprep.mubr.msk.bf16.mxu0 %vm2036_vm1, %v2035_v8 }
 0x413   : > { %1796 = vmatprep.subr.bf16.mxu0 %v2035_v8 }
 0x416   : > { %v1923_v35 = vpop.eup %1922 }
 0x417   : > { %v1075_v37 = vsel %vm788_vm2, %v1923_v35, 0.0  ;;  %v1079_v38 = vpack.c.bf16 %v1923_v35, %v1923_v35 }
 0x418   : > { %1076 = vadd.xlane.f32.xlu1 %v1075_v37 }
 0x419   : > { %1787 = vmatmul.mubr.msk.bf16.vlgmr.msra.gmra.mxu0 %vm788_vm2, %v1079_v38  ;;  %v1667_v38 = vld [vmem:[%s2447_s11] ss:$0 sm:$0xff] }
 0x41a   : > { %1797 = vmatpush3.bf16.msra.mxu0 %v1205_v39  ;;  %1798 = vmatprep.mubr.msk.bf16.mxu0 %vm2036_vm1, %v2035_v8 }
 0x41b   : > { %1810 = vmatprep.subr.bf16.mxu0 %v2035_v8 }
 0x41e   : > { %v1925_v40 = vpop.eup %1924 }
 0x41f   : > { %v1194_v41 = vsel %vm788_vm2, %v1925_v40, 0.0  ;;  %v1198_v42 = vpack.c.bf16 %v1925_v40, %v1925_v40  ;;  %v1668_v40 = vld [vmem:[%s2448_s12] ss:$0 sm:$0xff] }
 0x420   : > { %1195 = vadd.xlane.f32.xlu0 %v1194_v41 }
 0x421   : > { %1799 = vmatmul.mubr.msk.bf16.vlgmr.msra.gmra.mxu0 %vm788_vm2, %v1198_v42 }
 0x422   : > { %1814 = vmatprep.mubr.msk.bf16.mxu0 %vm2036_vm1, %v2035_v8  ;;  %1811 = vmatpush3.bf16.msra.mxu0 %v1906_v33 }
 0x423   : > { %1812 = vmatprep.subr.bf16.mxu0 %v2035_v8 }
 0x424   : > { %842 = vadd.xlane.f32.xlu0 %v841_v43 }
 0x45e   : > { %v887_v44 = vpop.f32.mrf.mxu0 }
 0x460   : > { %v1764_v45 = vpop.f32.mrf.mxu0 }
 0x461   : > { %v1909_v45 = vld [vmem:[%s2451_s15 + $0x30] sm:$0xff]  }
 0x462   : > { %v890_v46 = vpop.f32.mrf.mxu0 }
 0x463   : > { %v1910_v46 = vld [vmem:[%s2451_s15 + $0x28] sm:$0xff]  }
 0x464   : > { %v1765_v47 = vpop.f32.mrf.mxu0 }
 0x465   : > { %v1911_v47 = vld [vmem:[%s2451_s15 + $0x20] sm:$0xff]  }
 0x499   : > { %v957_v48 = vpop.xlane.xlu0 %956 }
 0x4a1   : > { %v1077_v54 = vpop.xlane.xlu1 %1076 }
 0x4a9   : > { %v1196_v49 = vpop.xlane.xlu0 %1195 }
 0x4ad   : > { %v843_v50 = vpop.xlane.xlu0 %842 }
 0x4ae   : > { %1926 = vrcp.f32 %v843_v50  ;;  %v1914_v50 = vld [vmem:[%s2451_s15 + $0x8] sm:$0xff]  }
 0x4af   : > { %1928 = vrcp.f32 %v957_v48  ;;  %v1912_v48 = vld [vmem:[%s2451_s15 + $0x18] sm:$0xff]  }
 0x4b0   : > { %1930 = vrcp.f32 %v1077_v54 }
 0x4b1   : > { %1932 = vrcp.f32 %v1196_v49  ;;  %v1913_v49 = vld [vmem:[%s2451_s15 + $0x10] sm:$0xff]  }
 0x4bb   : > { %v1927_v51 = vpop.eup %1926 }
 0x4bc   : > { %v893_v52 = vmul.f32 %v1927_v51, %v887_v44  ;;  %v1929_v55 = vpop.eup %1928  ;;  %v1908_v44 = vld [vmem:[%s2451_s15 + $0x38] sm:$0xff]   ;;  %v1915_v51 = vld [vmem:[%s2451_s15] sm:$0xff]  }
 0x4bd   : > { %v1931_v62 = vpop.eup %1930 }
 0x4be   : > { %v894_v53 = vpack.c.bf16 %v893_v52, %v893_v52  ;;  %v1933_v9 = vpop.eup %1932  ;;  %v1669_v52 = vld [vmem:[%s2450_s14] ss:$0 sm:$0xff] }
 0x4c0   : > { %896 = vst.msk [vmem:[#allocation2] sm:$0xf] %vm895_vm4, %v894_v53 }
 0x4d1   : > { %v1003_v56 = vpop.f32.mrf.mxu0 }
 0x4d2   : > { %v1009_v57 = vmul.f32 %v1929_v55, %v1003_v56 }
 0x4d3   : > { %v1776_v58 = vpop.f32.mrf.mxu0 }
 0x4d4   : > { %v1687_v59 = vpack.c.bf16 %v1009_v57, %v1009_v57 }
 0x4d5   : > { %v1006_v60 = vpop.f32.mrf.mxu0 }
 0x4d6   : > { %1014 = vrot.lane.b32.xlu1 %v1687_v59, %s2040_s24  ;;  %s554_s24 = scalar_lea.vmem [#allocation6], %s1636_s22 }
 0x4d7   : > { %v1777_v61 = vpop.f32.mrf.mxu0  ;;  %s1559_s27 = sshll.u32 %s554_s24, 4  ;;  %s2396_s27 = int_to_ptr.vmem [resolvable:$true] %s1559_s27 }
 0x4d9   : > { %v1122_v63 = vpop.f32.mrf.mxu0 }
 0x4da   : > { %v1128_v2 = vmul.f32 %v1931_v62, %v1122_v63 }
 0x4db   : > { %v1788_v3 = vpop.f32.mrf.mxu0 }
 0x4dc   : > { %v1688_v5 = vpack.c.bf16 %v1128_v2, %v1128_v2  ;;  %v1682_v2 = vld [vmem:[%s2452_s16] ss:$0 sm:$0xff] }
 0x4dd   : > { %v1125_v6 = vpop.f32.mrf.mxu0 }
 0x4de   : > { %1133 = vrot.lane.b32.xlu0 %v1688_v5, %s2041_s23  ;;  %s1966_s23 = scalar_lea.vmem %s2396_s27, 128 }
 0x4df   : > { %v1789_v7 = vpop.f32.mrf.mxu0  ;;  %p1967_p6 = scmp.ne.s32.totalorder %s2396_s27, %s1966_s23 }
 0x4e1   : > { %v1241_v10 = vpop.f32.mrf.mxu0  ;;  %p1968_p9 = pnand %p1967_p6, %p2172_p5 }
 0x4e2   : > { %v1247_v11 = vmul.f32 %v1933_v9, %v1241_v10 }
 0x4e3   : > { %v1800_v12 = vpop.f32.mrf.mxu0  ;;  %p1969_p10 = pneg %p1968_p9 }
 0x4e4   : > { %v1689_v13 = vpack.c.bf16 %v1247_v11, %v1247_v11 }
 0x4e5   : > { %v1244_v14 = vpop.f32.mrf.mxu0 }
 0x4e6   : > { %1252 = vrot.lane.b32.xlu1 %v1689_v13, %s2042_s30  ;;  %s2043_s30 = smov [#allocation6]  }
 0x4e7   : > { %v1801_v15 = vpop.f32.mrf.mxu0  ;;  %s1970_s22 = sshll.u32 %s2043_s30, 4  ;;  %s1971_s22 = int_to_ptr.vmem [resolvable:$false] %s1970_s22 }
 0x4e8   : > { %s1972_s29 = scalar_lea.vmem %s1971_s22, 256  ;;  %p1973_p11 = scmp.lt.s32.totalorder %s2396_s27, %s1971_s22 }
 0x4e9   : > { %p1974_p12 = scmp.lt.s32.totalorder %s1972_s29, %s1966_s23 }
 0x4eb   : > { %p1975_p13 = por %p1974_p12, %p1973_p11 }
 0x4ed   : > { %p1976_p0 = pnand %p1975_p13, %p1969_p10 }
 0x548   : > { %v1015_v16 = vpop.permute.xlu1 %1014 }
 0x549   : > { %1018 = vst.msk [vmem:[#allocation2] sm:$0xf] %vm1017_vm5, %v1015_v16 }
 0x550   : > { %v1134_v17 = vpop.permute.xlu0 %1133 }
 0x551   : > { %1137 = vst.msk [vmem:[#allocation2] sm:$0xf] %vm1136_vm6, %v1134_v17 }
 0x558   : > { %v1253_v18 = vpop.permute.xlu1 %1252 }
 0x559   : > { %1256 = vst.msk [vmem:[#allocation2] sm:$0xf] %vm1255_vm7, %v1253_v18 }
 0x560   : > { %v1257_v19 = vld [vmem:[#allocation2] sm:$0xf] }
 0x561   : > { %1807 = vmatmul.mubr.msk.bf16.vlgmr.msra.gmra.mxu1 %vm563_vm0, %v1257_v19 }
 0x562   : > { %1834 = vmatprep.mubr.msk.bf16.mxu1 %vm2036_vm1, %v2035_v8  ;;  %1819 = vmatpush3.bf16.msra.mxu1 %v1908_v44 }
 0x563   : > { %1820 = vmatprep.subr.bf16.mxu1 %v2035_v8 }
 0x566   : > { %1821 = vmatpush3.bf16.msra.mxu1 %v1909_v45 }
 0x567   : > { %1822 = vmatprep.subr.bf16.mxu1 %v2035_v8 }
 0x56a   : > { %1823 = vmatpush3.bf16.msra.mxu1 %v1910_v46 }
 0x56b   : > { %1824 = vmatprep.subr.bf16.mxu1 %v2035_v8 }
 0x56e   : > { %1825 = vmatpush3.bf16.msra.mxu1 %v1911_v47 }
 0x56f   : > { %1826 = vmatprep.subr.bf16.mxu1 %v2035_v8 }
 0x572   : > { %1827 = vmatpush3.bf16.msra.mxu1 %v1912_v48 }
 0x573   : > { %1828 = vmatprep.subr.bf16.mxu1 %v2035_v8 }
 0x576   : > { %1829 = vmatpush3.bf16.msra.mxu1 %v1913_v49 }
 0x577   : > { %1830 = vmatprep.subr.bf16.mxu1 %v2035_v8 }
 0x57a   : > { %1831 = vmatpush3.bf16.msra.mxu1 %v1914_v50 }
 0x57b   : > { %1832 = vmatprep.subr.bf16.mxu1 %v2035_v8 }
 0x57e   : > { %1833 = vmatpush3.bf16.msra.mxu1 %v1915_v51 }
 0x621   : > { %v1311_v20 = vpop.f32.mrf.mxu1 }
 0x622   : > { %v1317_v22 = vadd.f32 %v1311_v20, %v2205_v0  ;;  %v1907_v0 = vld [vmem:[#allocation3] sm:$0xff]  }
 0x623   : > { %v1808_v23 = vpop.f32.mrf.mxu1  ;;  %1813 = vmatpush3.bf16.msra.mxu0 %v1907_v0 }
 0x624   : > { %v2337_v24 = vadd.f32 %v1666_v21, %v1317_v22 }
 0x625   : > { %v1314_v25 = vpop.f32.mrf.mxu1 }
 0x626   : > { %v1328_v26 = vsel %vm563_vm0, %v2337_v24, 0.0 }
 0x627   : > { %1329 = vadd.xlane.f32.xlu1 %v1328_v26  ;;  %v1809_v27 = vpop.f32.mrf.mxu1 }
 0x6b0   : > { %v1330_v28 = vpop.xlane.xlu1 %1329 }
 0x6b1   : > { %v1331_v29 = vmul.f32 0.03125, %v1330_v28 }
 0x6b3   : > { %v1332_v30 = vsub.f32 %v2337_v24, %v1331_v29 }
 0x6b5   : > { %v1333_v31 = vmul.f32 %v1332_v30, %v1332_v30 }
 0x6b7   : > { %v1334_v32 = vsel %vm563_vm0, %v1333_v31, 0.0 }
 0x6b8   : > { %1335 = vadd.xlane.f32.xlu0 %v1334_v32 }
 0x741   : > { %v1336_v34 = vpop.xlane.xlu0 %1335 }
 0x742   : > { %v1337_v35 = vmul.f32 0.03125, %v1336_v34 }
 0x744   : > { %v1338_v36 = vadd.f32 1e-05, %v1337_v35 }
 0x746   : > { %1934 = vrsqrt.f32 %v1338_v36 }
 0x753   : > { %v1935_v37 = vpop.eup %1934 }
 0x754   : > { %v1340_v39 = vmul.f32 %v1935_v37, %v1332_v30 }
 0x756   : > { %v1347_v41 = vmul.f32 %v1667_v38, %v1340_v39 }
 0x758   : > { %v1354_v42 = vadd.f32 %v1668_v40, %v1347_v41 }
 0x75a   : > { %v1355_v43 = vpack.c.bf16 %v1354_v42, %v1354_v42 }
 0x75c   : > { %1815 = vmatmul.mubr.msk.bf16.vlgmr.msra.gmra.mxu0 %vm563_vm0, %v1355_v43 }
 0x81c   : > { %v1416_v53 = vpop.f32.mrf.mxu0 }
 0x81d   : > { %v1417_v54 = vadd.f32 %v1669_v52, %v1416_v53 }
 0x81e   : > { %v1816_v55 = vpop.f32.mrf.mxu0 }
 0x81f   : > { %v1673_v56 = vmul.f32 -1.702, %v1417_v54 }
 0x820   : > { %v1419_v57 = vpop.f32.mrf.mxu0 }
 0x821   : > { %v1424_v58 = vmul.f32 1.442695, %v1673_v56 }
 0x822   : > { %v1817_v59 = vpop.f32.mrf.mxu0 }
 0x823   : > { %1936 = vpow2.f32 %v1424_v58 }
 0x830   : > { %v1937_v8 = vpop.eup %1936 }
 0x831   : > { %v1426_v60 = vadd.f32 1.0, %v1937_v8 }
 0x833   : > { %1938 = vrcp.f32 %v1426_v60 }
 0x840   : > { %v1939_v61 = vpop.eup %1938 }
 0x841   : > { %v1429_v62 = vmul.f32 %v1939_v61, %v1417_v54 }
 0x843   : > { %v1430_v63 = vpack.c.bf16 %v1429_v62, %v1429_v62 }
 0x845   : > { %1835 = vmatmul.mubr.bf16.vlgmr.msra.gmra.mxu1 %v1430_v63 }
 0x905   : > { %v1529_v1 = vpop.f32.mrf.mxu1 }
 0x906   : > { %v1535_v3 = vadd.f32 %v1529_v1, %v2337_v24 }
 0x907   : > { %v1836_v4 = vpop.f32.mrf.mxu1 }
 0x908   : > { %v1543_v5 = vadd.f32 %v1682_v2, %v1535_v3 }
 0x909   : > { %v1532_v6 = vpop.f32.mrf.mxu1 }
 0x90a   : > { %1544 = vst.msk [vmem:[%s554_s24] sm:$0xff] %vm563_vm0, %v1543_v5 }
 0x90b   : > { %v1837_v7 = vpop.f32.mrf.mxu1 }
 0x90c   : > { %1979 = shalt.err (!%p1976_p0)
}
 0x90d   : > { %s1980_s26 = scalar_lea.hbm %s2394_s21, 128  ;;  %s1984_s24 = scalar_lea.hbm %s2453_s17, 256 }
 0x90e   : > { %p1981_p1 = scmp.ne.s32.totalorder %s2394_s21, %s1980_s26  ;;  %p1985_p4 = scmp.lt.s32.totalorder %s2394_s21, %s2453_s17 }
 0x90f   : > { %p1986_p7 = scmp.lt.s32.totalorder %s1984_s24, %s1980_s26 }
 0x910   : > { %p1982_p2 = pnand %p1981_p1, %p2172_p5 }
 0x911   : > { %p1987_p8 = por %p1986_p7, %p1985_p4 }
 0x912   : > { %p1983_p3 = pneg %p1982_p2 }
 0x914   : > { %p1988_p6 = pnand %p1987_p8, %p1983_p3 }
 0x916   : > { %1991 = shalt.err (!%p1988_p6)
}
 0x917   : > { %1842 = dma.vmem_to_hbm [thread:$0]  (%p2172_p5), %s2396_s27, 128, %s2394_s21, %s1546_s28  }
 0x918 PF: > { %s2473_s23 = sld [smem:[#allocation11_spill]] }
 0x919   : > { %s2474_s30 = sld [smem:[#allocation9_spill]] }
 0x91a   : > { %s2475_s22 = sld [smem:[#allocation14_spill]] }
 0x91e   : > { %p1854_p9 = scmp.ge.s32.totalorder %s2473_s23, 2 }
 0x91f   : > { %s1571_s29 = sand.u32 1, %s2474_s30  }
 0x920   : > { %p2476_p10 = scmp.ne.s32.totalorder %s2475_s22, 0  ;;  %s1572_s18 = scalar_lea.sflag [#allocation5], %s1571_s29 }
 0x922   : > { %p1849_p11 = pnand %p1854_p9, %p2476_p10 }
 0x924   : > { %p1850_p12 = pneg %p1849_p11 }
 0x926   : > { %2013 = dma.done.wait (%p1850_p12), %s1572_s18, 128  }
 0x927   : > { %2015 = vsyncadd (%p1850_p12), %s1572_s18, 4294967168  ;;  %s2477_s27 = sld [smem:[#allocation12_spill]]  ;;  %s2480_s24 = smov %s2022_s25 }
 0x928   : > { %s2478_s26 = sld [smem:[#allocation10_spill]] }
 0x929   : > { %s2479_s19 = sld [smem:[#allocation13_spill]] }
 0x92d   : > { %p28_p13 = scmp.ge.s32.totalorder %s2477_s27, 4  }
 0x92e   : > { %s2481_s25 = smov %s2478_s26 }
 0x92f   : > { %s2482_s26 = smov %s2479_s19  ;;  %30 = sbr.rel (!%p28_p13) target bundleno = 7 (0x7), region = 128 }
 0x934   :  { %1577 = vsyncpa [#allocation4], 1 }
 0x935   :  { %1579 = vsyncpa [#allocation4 + $0x1], 1 }
 0x936   :  { %1580 = vsyncpa [#allocation5], 1 }
 0x937   :  { %1582 = vsyncpa [#allocation5 + $0x1], 1 }

</bundles_post_ra>
